<compile_context>
chip_gen: v7x
topology: tpu7x:2x2x1
jax: 0.10.0
libtpu: 0.0.40
codegen_flags: <defaults>
</compile_context>

<pallas_src>
import functools

import jax
import jax.numpy as jnp
from jax.experimental import pallas as pl
from jax.experimental.pallas import tpu as pltpu


# ---------------------------------------------------------------------------
# Fused pooling-pyramid kernel (k consecutive MaxPool2d(2,2) levels)
# ---------------------------------------------------------------------------
def _pyramid_kernel(x_ref, *refs, level_dims):
    """Compute k pooling levels for one band of merged (N*C*H) rows.

    x_ref : (bh, W)  band of merged rows, W dense on lanes.
    refs  : k output refs  out[d] : (bh >> (d+1), W_{d+1})
            k scratch refs t[d]   : (2*W_{d+1}, bh >> (d+1))
    level_dims : static ((rows_out, cols_out), ...) per level for this band.
    """
    k = len(level_dims)
    out_refs = refs[:k]
    t_refs = refs[k:]
    cur = x_ref
    for d, (ro, wo) in enumerate(level_dims):
        # Row-pair max: stride-2 sublane reads (channel boundaries are always
        # even multiples of the row stride, so pairs never straddle channels).
        rmax = jnp.maximum(cur[pl.ds(0, ro, 2), :], cur[pl.ds(1, ro, 2), :])
        rmax = rmax[:, : 2 * wo]                         # drop trailing odd col
        # Column-pair max: cheap on-chip transpose into VMEM scratch turns the
        # lane-pair max into another stride-2 sublane max.
        t_refs[d][...] = jnp.transpose(rmax, (1, 0))     # (2*wo, ro)
        cmax = jnp.maximum(t_refs[d][pl.ds(0, wo, 2), :],
                           t_refs[d][pl.ds(1, wo, 2), :])
        out_refs[d][...] = jnp.transpose(cmax, (1, 0))   # (ro, wo)
        cur = out_refs[d]


def _pick_band_rows(total_rows, w, itemsize, k):
    """Rows of the merged (N*C*H, W) view processed per grid step.

    Multiple of 8 * 2**k (keeps every level's output block sublane-aligned),
    ~1 MiB of input payload, and >= 2 grid steps when possible so the
    "parallel" axis can shard across TensorCores.
    """
    align = 8 << k
    if total_rows <= align:
        return total_rows
    target = max(1, (1 << 20) // max(1, w * itemsize))
    bh = max(align, (target // align) * align)
    half = ((total_rows // 2) // align) * align
    if half >= align:
        bh = min(bh, half)
    return min(bh, total_rows)


def _fused_pool_stack(x, k):
    """k fused MaxPool2d(2, 2) levels on an NCHW tensor.  Needs H % 2**k == 0."""
    N, C, H, W = x.shape
    widths = [W]
    for _ in range(k):
        widths.append(widths[-1] // 2)

    total_rows = N * C * H
    xr = x.reshape(total_rows, W)          # free view: channels stacked on rows
    bh = _pick_band_rows(total_rows, W, x.dtype.itemsize, k)
    level_dims = tuple((bh >> (d + 1), widths[d + 1]) for d in range(k))

    out_shapes = tuple(
        jax.ShapeDtypeStruct((total_rows >> (d + 1), widths[d + 1]), x.dtype)
        for d in range(k))
    out_specs = [
        pl.BlockSpec((bh >> (d + 1), widths[d + 1]), lambda i: (i, 0))
        for d in range(k)]
    scratch_shapes = [
        pltpu.VMEM((2 * widths[d + 1], bh >> (d + 1)), x.dtype)
        for d in range(k)]

    outs = pl.pallas_call(
        functools.partial(_pyramid_kernel, level_dims=level_dims),
        out_shape=out_shapes,
        grid=(pl.cdiv(total_rows, bh),),
        in_specs=[pl.BlockSpec((bh, W), lambda i: (i, 0))],
        out_specs=out_specs,
        scratch_shapes=scratch_shapes,
        compiler_params=pltpu.CompilerParams(
            dimension_semantics=("parallel",),
            vmem_limit_bytes=32 * 1024 * 1024,
        ),
    )(xr)

    return [outs[d].reshape(N, C, H >> (d + 1), widths[d + 1]) for d in range(k)]


# ---------------------------------------------------------------------------
# Single-level fallback kernel (proven; handles odd heights / tiny shapes)
# ---------------------------------------------------------------------------
def _pool_kernel(x_ref, o_ref, t_ref, *, wo):
    # x_ref: (R, 2, W) row-pair strips; o_ref: (R, Wo); t_ref: (W, R) scratch.
    rmax = jnp.maximum(x_ref[:, 0, :], x_ref[:, 1, :])            # (R, W)
    t_ref[...] = jnp.transpose(rmax, (1, 0))                      # (W, R)
    cmax = jnp.maximum(t_ref[pl.ds(0, wo, 2), :],
                       t_ref[pl.ds(1, wo, 2), :])                 # (Wo, R)
    o_ref[...] = jnp.transpose(cmax, (1, 0))                      # (R, Wo)


def _pick_block_rows(m, w, itemsize):
    """Row-pair strips per grid step: ~1 MiB payload, multiple of 8."""
    payload = max(1, 2 * w * itemsize)
    r = max(1, (1 << 20) // payload)
    r = max(8, r - (r % 8))
    half = ((m // 2) // 8) * 8
    if half >= 8:
        r = min(r, half)
    if r >= m:
        r = m
    return r


def maxpool2x2_nchw(x):
    """nn.MaxPool2d(kernel_size=2, stride=2) on one NCHW tensor via Pallas."""
    N, C, H, W = x.shape
    Ho, Wo = H // 2, W // 2
    if Ho == 0 or Wo == 0:
        return jnp.zeros((N, C, Ho, Wo), x.dtype)

    x = x[:, :, : 2 * Ho, : 2 * Wo]       # PyTorch floors the output size
    We = 2 * Wo
    M = N * C * Ho
    xr = x.reshape(M, 2, We)              # free view: 2-row pooling strips
    R = _pick_block_rows(M, We, x.dtype.itemsize)

    out = pl.pallas_call(
        functools.partial(_pool_kernel, wo=Wo),
        out_shape=jax.ShapeDtypeStruct((M, Wo), x.dtype),
        grid=(pl.cdiv(M, R),),
        in_specs=[pl.BlockSpec((R, 2, We), lambda i: (i, 0, 0))],
        out_specs=pl.BlockSpec((R, Wo), lambda i: (i, 0)),
        scratch_shapes=[pltpu.VMEM((We, R), x.dtype)],
        compiler_params=pltpu.CompilerParams(
            dimension_semantics=("parallel",),
            vmem_limit_bytes=32 * 1024 * 1024,
        ),
    )(xr)
    return out.reshape(N, C, Ho, Wo)


# ---------------------------------------------------------------------------
# Module
# ---------------------------------------------------------------------------
class PrevDefPooling:
    """JAX/Pallas port of the PyTorch module (no learnable parameters)."""

    def __init__(self, n_depth):
        self.n_depth = n_depth

    def __call__(self, x):
        output = [x]
        remaining = self.n_depth
        while remaining > 0:
            _, _, H, W = x.shape
            # Fuse as many consecutive levels as possible: each fused level
            # needs an even (>= 2) height so stride-2 row pairs never straddle
            # a channel boundary in the merged row view, and width >= 2.
            k, h, w = 0, H, W
            while k < remaining and h >= 2 and w >= 2 and h % 2 == 0:
                h //= 2
                w //= 2
                k += 1
            if k == 0:
                # Odd / degenerate height: single-level kernel does the trim.
                x = maxpool2x2_nchw(x)
                output.append(x)
                remaining -= 1
            else:
                levels = _fused_pool_stack(x, k)
                output.extend(levels)
                x = levels[-1]
                remaining -= k
        return output


# ---------------------------------------------------------------------------
# Reference + self-test
# ---------------------------------------------------------------------------
def _ref_pool_nchw(x):
    N, C, H, W = x.shape
    Ho, Wo = H // 2, W // 2
    if Ho == 0 or Wo == 0:
        return jnp.zeros((N, C, Ho, Wo), x.dtype)
    return x[:, :, : 2 * Ho, : 2 * Wo].reshape(N, C, Ho, 2, Wo, 2).max(axis=(3, 5))


if __name__ == "__main__":
    key = jax.random.PRNGKey(0)
    cases = [((2, 4, 16, 16), 3),     # fully fused pyramid, multi-band grid
             ((1, 3, 18, 20), 3),     # odd sizes: fused + fallback mix, trims
             ((2, 2, 64, 128), 4)]    # lane-dense input, 4 fused levels
    for shape, n_depth in cases:
        key, sub = jax.random.split(key)
        x = jax.random.normal(sub, shape, dtype=jnp.float32)

        outs = PrevDefPooling(n_depth)(x)
        outs = [jax.block_until_ready(o) for o in outs]

        ref = [x]
        cur = x
        for _ in range(n_depth):
            cur = _ref_pool_nchw(cur)
            ref.append(cur)

        assert len(outs) == n_depth + 1
        for o, r in zip(outs, ref):
            assert o.shape == r.shape and o.dtype == r.dtype
            assert jnp.allclose(o, r), f"mismatch vs reference for {shape}"

    print("KERNEL_OK")
</pallas_src>

<mosaic_0001>
module attributes {stable_mosaic.version = 11 : i64} {
  func.func @_pyramid_kernel(%arg0: i32, %arg1: memref<64x16xf32, #tpu.memory_space<vmem>>, %arg2: memref<32x8xf32, #tpu.memory_space<vmem>>, %arg3: memref<16x4xf32, #tpu.memory_space<vmem>>, %arg4: memref<8x2xf32, #tpu.memory_space<vmem>>, %arg5: memref<16x32xf32, #tpu.memory_space<vmem>>, %arg6: memref<8x16xf32, #tpu.memory_space<vmem>>, %arg7: memref<4x8xf32, #tpu.memory_space<vmem>>) attributes {dimension_semantics = [#tpu.dimension_semantics<parallel>], iteration_bounds = array<i64: 2>, scalar_prefetch = 0 : i64, scratch_operands = 3 : i64, tpu.core_type = #tpu.core_type<tc>, window_params = [{transform_indices = @transform_0, window_bounds = array<i64: 64, 16>}, {transform_indices = @transform_1, window_bounds = array<i64: 32, 8>}, {transform_indices = @transform_2, window_bounds = array<i64: 16, 4>}, {transform_indices = @transform_3, window_bounds = array<i64: 8, 2>}]} {
    %c0 = arith.constant 0 : index
    %c0_0 = arith.constant 0 : index
    %0 = tpu.strided_load %arg1[%c0, %c0_0] {strides = array<i32: 2, 1>} : memref<64x16xf32, #tpu.memory_space<vmem>>, vector<32x16xf32>
    %c1 = arith.constant 1 : index
    %c0_1 = arith.constant 0 : index
    %1 = tpu.strided_load %arg1[%c1, %c0_1] {strides = array<i32: 2, 1>} : memref<64x16xf32, #tpu.memory_space<vmem>>, vector<32x16xf32>
    %2 = arith.maximumf %0, %1 : vector<32x16xf32>
    %3 = tpu.transpose %2, [1, 0] : vector<32x16xf32> -> vector<16x32xf32>
    %c0_2 = arith.constant 0 : index
    %c0_3 = arith.constant 0 : index
    %4 = vector.load %arg5[%c0_2, %c0_3] : memref<16x32xf32, #tpu.memory_space<vmem>>, vector<16x32xf32>
    tpu.vector_store %arg5[%c0_2, %c0_3], %3 {strides = array<i32>} : memref<16x32xf32, #tpu.memory_space<vmem>>, vector<16x32xf32>,
    %c0_4 = arith.constant 0 : index
    %c0_5 = arith.constant 0 : index
    %5 = tpu.strided_load %arg5[%c0_4, %c0_5] {strides = array<i32: 2, 1>} : memref<16x32xf32, #tpu.memory_space<vmem>>, vector<8x32xf32>
    %c1_6 = arith.constant 1 : index
    %c0_7 = arith.constant 0 : index
    %6 = tpu.strided_load %arg5[%c1_6, %c0_7] {strides = array<i32: 2, 1>} : memref<16x32xf32, #tpu.memory_space<vmem>>, vector<8x32xf32>
    %7 = arith.maximumf %5, %6 : vector<8x32xf32>
    %8 = tpu.transpose %7, [1, 0] : vector<8x32xf32> -> vector<32x8xf32>
    %c0_8 = arith.constant 0 : index
    %c0_9 = arith.constant 0 : index
    %9 = vector.load %arg2[%c0_8, %c0_9] : memref<32x8xf32, #tpu.memory_space<vmem>>, vector<32x8xf32>
    tpu.vector_store %arg2[%c0_8, %c0_9], %8 {strides = array<i32>} : memref<32x8xf32, #tpu.memory_space<vmem>>, vector<32x8xf32>,
    %c0_10 = arith.constant 0 : index
    %c0_11 = arith.constant 0 : index
    %10 = tpu.strided_load %arg2[%c0_10, %c0_11] {strides = array<i32: 2, 1>} : memref<32x8xf32, #tpu.memory_space<vmem>>, vector<16x8xf32>
    %c1_12 = arith.constant 1 : index
    %c0_13 = arith.constant 0 : index
    %11 = tpu.strided_load %arg2[%c1_12, %c0_13] {strides = array<i32: 2, 1>} : memref<32x8xf32, #tpu.memory_space<vmem>>, vector<16x8xf32>
    %12 = arith.maximumf %10, %11 : vector<16x8xf32>
    %13 = tpu.transpose %12, [1, 0] : vector<16x8xf32> -> vector<8x16xf32>
    %c0_14 = arith.constant 0 : index
    %c0_15 = arith.constant 0 : index
    %14 = vector.load %arg6[%c0_14, %c0_15] : memref<8x16xf32, #tpu.memory_space<vmem>>, vector<8x16xf32>
    tpu.vector_store %arg6[%c0_14, %c0_15], %13 {strides = array<i32>} : memref<8x16xf32, #tpu.memory_space<vmem>>, vector<8x16xf32>,
    %c0_16 = arith.constant 0 : index
    %c0_17 = arith.constant 0 : index
    %15 = tpu.strided_load %arg6[%c0_16, %c0_17] {strides = array<i32: 2, 1>} : memref<8x16xf32, #tpu.memory_space<vmem>>, vector<4x16xf32>
    %c1_18 = arith.constant 1 : index
    %c0_19 = arith.constant 0 : index
    %16 = tpu.strided_load %arg6[%c1_18, %c0_19] {strides = array<i32: 2, 1>} : memref<8x16xf32, #tpu.memory_space<vmem>>, vector<4x16xf32>
    %17 = arith.maximumf %15, %16 : vector<4x16xf32>
    %18 = tpu.transpose %17, [1, 0] : vector<4x16xf32> -> vector<16x4xf32>
    %c0_20 = arith.constant 0 : index
    %c0_21 = arith.constant 0 : index
    %19 = vector.load %arg3[%c0_20, %c0_21] : memref<16x4xf32, #tpu.memory_space<vmem>>, vector<16x4xf32>
    tpu.vector_store %arg3[%c0_20, %c0_21], %18 {strides = array<i32>} : memref<16x4xf32, #tpu.memory_space<vmem>>, vector<16x4xf32>,
    %c0_22 = arith.constant 0 : index
    %c0_23 = arith.constant 0 : index
    %20 = tpu.strided_load %arg3[%c0_22, %c0_23] {strides = array<i32: 2, 1>} : memref<16x4xf32, #tpu.memory_space<vmem>>, vector<8x4xf32>
    %c1_24 = arith.constant 1 : index
    %c0_25 = arith.constant 0 : index
    %21 = tpu.strided_load %arg3[%c1_24, %c0_25] {strides = array<i32: 2, 1>} : memref<16x4xf32, #tpu.memory_space<vmem>>, vector<8x4xf32>
    %22 = arith.maximumf %20, %21 : vector<8x4xf32>
    %23 = tpu.transpose %22, [1, 0] : vector<8x4xf32> -> vector<4x8xf32>
    %c0_26 = arith.constant 0 : index
    %c0_27 = arith.constant 0 : index
    %24 = vector.load %arg7[%c0_26, %c0_27] : memref<4x8xf32, #tpu.memory_space<vmem>>, vector<4x8xf32>
    tpu.vector_store %arg7[%c0_26, %c0_27], %23 {strides = array<i32>} : memref<4x8xf32, #tpu.memory_space<vmem>>, vector<4x8xf32>,
    %c0_28 = arith.constant 0 : index
    %c0_29 = arith.constant 0 : index
    %25 = tpu.strided_load %arg7[%c0_28, %c0_29] {strides = array<i32: 2, 1>} : memref<4x8xf32, #tpu.memory_space<vmem>>, vector<2x8xf32>
    %c1_30 = arith.constant 1 : index
    %c0_31 = arith.constant 0 : index
    %26 = tpu.strided_load %arg7[%c1_30, %c0_31] {strides = array<i32: 2, 1>} : memref<4x8xf32, #tpu.memory_space<vmem>>, vector<2x8xf32>
    %27 = arith.maximumf %25, %26 : vector<2x8xf32>
    %28 = tpu.transpose %27, [1, 0] : vector<2x8xf32> -> vector<8x2xf32>
    %c0_32 = arith.constant 0 : index
    %c0_33 = arith.constant 0 : index
    %29 = vector.load %arg4[%c0_32, %c0_33] : memref<8x2xf32, #tpu.memory_space<vmem>>, vector<8x2xf32>
    tpu.vector_store %arg4[%c0_32, %c0_33], %28 {strides = array<i32>} : memref<8x2xf32, #tpu.memory_space<vmem>>, vector<8x2xf32>,
    return
  }
  func.func @transform_0(%arg0: i32) -> (i32, i32) {
    %c0_i32 = arith.constant 0 : i32
    %c0_i32_0 = arith.constant 0 : i32
    return %arg0, %c0_i32 : i32, i32
  }
  func.func @transform_1(%arg0: i32) -> (i32, i32) {
    %c0_i32 = arith.constant 0 : i32
    %c0_i32_0 = arith.constant 0 : i32
    return %arg0, %c0_i32 : i32, i32
  }
  func.func @transform_2(%arg0: i32) -> (i32, i32) {
    %c0_i32 = arith.constant 0 : i32
    %c0_i32_0 = arith.constant 0 : i32
    return %arg0, %c0_i32 : i32, i32
  }
  func.func @transform_3(%arg0: i32) -> (i32, i32) {
    %c0_i32 = arith.constant 0 : i32
    %c0_i32_0 = arith.constant 0 : i32
    return %arg0, %c0_i32 : i32, i32
  }
}

</mosaic_0001>

<bundles_post_ra>
// kernel: tpu_custom_call.1
= control target key start
LH: loop header
LB: loop body
LE: loop exit
PB: predicated region body
PF: predicated region fallthrough
CT: control target
= control target key end

     0   :  { %s634_s12 = smov 0   ;;  %s664_s0 = inlined_call_operand.vmem [shape: f32[128,16], index: 0, kind: input, shape index: {}]   ;;  %s665_s1 = inlined_call_operand.vmem [shape: f32[64,8], index: 1, kind: output, shape index: {0}]   ;;  %s666_s2 = inlined_call_operand.vmem [shape: f32[32,4], index: 2, kind: output, shape index: {1}]   ;;  %s667_s3 = inlined_call_operand.vmem [shape: f32[16,2], index: 3, kind: output, shape index: {2}]  }
   0x1 LB: > { %s640_s13 = sadd.s32 4294967295, %s612_s12   ;;  %p576_p0 = scmp.ge.s32.totalorder %s612_s12, 1  ;;  %s612_s12 = sphi %s634_s12, %s14_s12  }
   0x2   : > { %p143_p1 = scmp.lt.s32.totalorder %s612_s12, 3 }
   0x4   : > { %p144_p2 = pnand %p576_p0, %p143_p1 }
   0x5   : > { %s577_s14 = sshll.u32 (!%p144_p2), %s640_s13, 3  ;;  %vm249_vm0 = vcmask (!%p144_p2), 261120   ;;  %s579_s19 = sshll.u32 (!%p144_p2), %s640_s13, 2  ;;  %vm288_vm1 = vcmask (!%p144_p2), 64512   ;;  %vm334_vm2 = vcmask (!%p144_p2), 130048   ;;  %vm372_vm3 = vcmask (!%p144_p2), 31744  }
   0x6   : > { %147 = sbr.rel (%p144_p2) target bundleno = 860 (0x35c), region = 24  ;;  %p177_p3 = scmp.lt.s32.totalorder (!%p144_p2), %s577_s14, 15  ;;  %vm411_vm4 = vcmask (!%p144_p2), 60416   ;;  %vm449_vm5 = vcmask (!%p144_p2), 15360  }
   0x7   : > { %p183_p4 = scmp.lt.s32.totalorder (!%p144_p2), %s579_s19, 7  ;;  %s581_s24 = sshll.u32 (!%p144_p2), %s640_s13, 1 }
   0x8   : > { %p189_p5 = scmp.lt.s32.totalorder (!%p144_p2), %s581_s24, 3  ;;  %p194_p6 = scmp.lt.s32.totalorder (!%p144_p2), %s640_s13, 1 }
   0xd   : > { %s669_s14 = smov (!%p177_p3, %s577_s14), 15  ;;  %s671_s19 = smov (!%p183_p4, %s579_s19), 7 }
   0xe   : > { %s578_s15 = sshll.u32 %s669_s14, 3  ;;  %s580_s20 = sshll.u32 %s671_s19, 3 }
   0xf   : > { %s180_s18 = scalar_lea.vmem %s664_s0, %s578_s15  ;;  %s186_s23 = scalar_lea.vmem %s665_s1, %s580_s20 }
  0x10   : > { %v198_v0 = vld [vmem:[%s180_s18] ss:$2 sm:$0xff]  ;;  %v587_v1 = vld [vmem:[%s180_s18 + $0x1] ss:$2 sm:$0xff]  ;;  %v584_v2 = vld [vmem:[%s180_s18 + $0x10] ss:$2 sm:$0xff] }
  0x11   : > { %v213_v3 = vmax.f32 %v198_v0, %v587_v1  ;;  %v588_v4 = vld [vmem:[%s180_s18 + $0x11] ss:$2 sm:$0xff]  ;;  %v585_v6 = vld [vmem:[%s180_s18 + $0x20] ss:$2 sm:$0xff]  ;;  %v589_v7 = vld [vmem:[%s180_s18 + $0x21] ss:$2 sm:$0xff] }
  0x12   : > { %v214_v5 = vmax.f32 %v584_v2, %v588_v4  ;;  %v215_v8 = vmax.f32 %v585_v6, %v589_v7  ;;  %v586_v9 = vld [vmem:[%s180_s18 + $0x30] ss:$2 sm:$0xff]  ;;  %v590_v10 = vld [vmem:[%s180_s18 + $0x31] ss:$2 sm:$0xff]  ;;  %s673_s24 = smov (!%p189_p5, %s581_s24), 3  ;;  %s675_s13 = smov (!%p194_p6, %s640_s13), 1 }
  0x13   : > { %217 = vxpose.xlu0.b32.start [1/4] (short) (narrow) %v213_v3, 16  ;;  %v216_v11 = vmax.f32 %v586_v9, %v590_v10  ;;  %s582_s25 = sshll.u32 %s673_s24, 3  ;;  %s583_s29 = sshll.u32 %s675_s13, 3 }
  0x14   : > { %s192_s28 = scalar_lea.vmem %s666_s2, %s582_s25  ;;  %s197_s5 = scalar_lea.vmem %s667_s3, %s583_s29 }
  0x17   : > { %218 = vxpose.xlu0.b32.cont [2/4] (short) (narrow) %v214_v5, 16 }
  0x1b   : > { %219 = vxpose.xlu0.b32.cont [3/4] (short) (narrow) %v215_v8, 16 }
  0x1f   : > { %220 = vxpose.xlu0.b32.end [4/4] (short) (narrow) %v216_v11, 16 }
  0x93   : > { %v233_v12 = vpop.trf.xlu0 }
  0x94   : > { %250 = vst.msk [vmem:[#allocation2] sm:$0xff] %vm249_vm0, %v233_v12 }
  0x97   : > { %v234_v13 = vpop.trf.xlu0 }
  0x98   : > { %251 = vst.msk [vmem:[#allocation2 + $0x8] sm:$0xff] %vm249_vm0, %v234_v13 }
  0x9f   : > { %v252_v14 = vld [vmem:[#allocation2] ss:$2 sm:$0xff]  ;;  %v254_v15 = vld [vmem:[#allocation2 + $0x1] ss:$2 sm:$0xff] }
  0xa0   : > { %v255_v16 = vmax.f32 %v252_v14, %v254_v15 }
  0xa2   : > { %256 = vxpose.xlu1.b32.start.end [1/1] (short) (narrow) %v255_v16, 32 }
 0x122   : > { %v272_v17 = vpop.trf.xlu1 }
 0x123   : > { %289 = vst.msk [vmem:[%s186_s23] sm:$0xff] %vm288_vm1, %v272_v17 }
 0x126   : > { %v273_v18 = vpop.trf.xlu1 }
 0x127   : > { %290 = vst.msk [vmem:[%s186_s23 + $0x8] sm:$0xff] %vm288_vm1, %v273_v18 }
 0x12a   : > { %v274_v19 = vpop.trf.xlu1 }
 0x12b   : > { %291 = vst.msk [vmem:[%s186_s23 + $0x10] sm:$0xff] %vm288_vm1, %v274_v19 }
 0x12e   : > { %v275_v20 = vpop.trf.xlu1  ;;  %v293_v21 = vld [vmem:[%s186_s23] ss:$2 sm:$0xff]  ;;  %v592_v22 = vld [vmem:[%s186_s23 + $0x1] ss:$2 sm:$0xff] }
 0x12f   : > { %292 = vst.msk [vmem:[%s186_s23 + $0x18] sm:$0xff] %vm288_vm1, %v275_v20  ;;  %v300_v23 = vmax.f32 %v293_v21, %v592_v22 }
 0x131   : > { %302 = vxpose.xlu1.b32.start [1/2] (short) (narrow) %v300_v23, 8 }
 0x136   : > { %v591_v24 = vld [vmem:[%s186_s23 + $0x10] ss:$2 sm:$0xff]  ;;  %v593_v25 = vld [vmem:[%s186_s23 + $0x11] ss:$2 sm:$0xff] }
 0x137   : > { %v301_v26 = vmax.f32 %v591_v24, %v593_v25 }
 0x139   : > { %303 = vxpose.xlu1.b32.end [2/2] (short) (narrow) %v301_v26, 8 }
 0x1b5   : > { %v318_v27 = vpop.trf.xlu1 }
 0x1b6   : > { %335 = vst.msk [vmem:[#allocation3] sm:$0xff] %vm334_vm2, %v318_v27 }
 0x1bd   : > { %v336_v28 = vld [vmem:[#allocation3] ss:$2 sm:$0xf]  ;;  %v338_v29 = vld [vmem:[#allocation3 + $0x1] ss:$2 sm:$0xf] }
 0x1be   : > { %v339_v30 = vmax.f32 %v336_v28, %v338_v29 }
 0x1c0   : > { %340 = vxpose.xlu0.b32.start.end [1/1] (short) (narrow) %v339_v30, 16 }
 0x240   : > { %v356_v31 = vpop.trf.xlu0 }
 0x241   : > { %373 = vst.msk [vmem:[%s192_s28] sm:$0xff] %vm372_vm3, %v356_v31 }
 0x244   : > { %v357_v32 = vpop.trf.xlu0 }
 0x245   : > { %374 = vst.msk [vmem:[%s192_s28 + $0x8] sm:$0xff] %vm372_vm3, %v357_v32 }
 0x24c   : > { %v375_v33 = vld [vmem:[%s192_s28] ss:$2 sm:$0xff]  ;;  %v594_v34 = vld [vmem:[%s192_s28 + $0x1] ss:$2 sm:$0xff] }
 0x24d   : > { %v378_v35 = vmax.f32 %v375_v33, %v594_v34 }
 0x24f   : > { %379 = vxpose.xlu0.b32.start.end [1/1] (short) (narrow) %v378_v35, 8 }
 0x2cf   : > { %v395_v36 = vpop.trf.xlu0 }
 0x2d0   : > { %412 = vst.msk [vmem:[#allocation4] sm:$0xf] %vm411_vm4, %v395_v36 }
 0x2d7   : > { %v413_v37 = vld [vmem:[#allocation4] ss:$2 sm:$0x3]  ;;  %v415_v38 = vld [vmem:[#allocation4 + $0x1] ss:$2 sm:$0x3] }
 0x2d8   : > { %v416_v39 = vmax.f32 %v413_v37, %v415_v38 }
 0x2da   : > { %417 = vxpose.xlu1.b32.start.end [1/1] (short) (narrow) %v416_v39, 8 }
 0x35a   : > { %v433_v40 = vpop.trf.xlu1 }
 0x35b   : > { %450 = vst.msk [vmem:[%s197_s5] sm:$0xff] %vm449_vm5, %v433_v40 }
 0x35c PF: > { %s14_s12 = sadd.s32 1, %s612_s12  }
 0x35d   : > { %p11_p7 = scmp.ge.s32.totalorder %s14_s12, 4  }
 0x35f   :  { %13 = sbr.rel (!%p11_p7) target bundleno = 1 (0x1), region = 92 }

</bundles_post_ra>
